<compile_context>
chip_gen: v5e
topology: v5e:2x2
jax: 0.10.0
libtpu: 0.0.40
codegen_flags: <defaults>
</compile_context>

<pallas_src>
import numpy as np
import jax
import jax.numpy as jnp
from jax import lax
from jax.experimental import pallas as pl
from jax.experimental.pallas import tpu as pltpu

# ------------------------------------------------------------------
# Synthetic, deterministic OFDM configuration (mirrors ResourceGrid /
# StreamManagement / PilotPattern attributes used by the module).
# ------------------------------------------------------------------
NUM_TX = 2
NUM_STREAMS_PER_TX = 2
NUM_RX = 2
NUM_STREAMS_PER_RX = 2
NUM_OFDM_SYMBOLS = 4
FFT_SIZE = 16
NUM_EFF_SC = 12            # effective (non-guard) subcarriers
BATCH = 8                  # 8 batch rows -> a full (8,128) sublane group
LANE = 128

N_RXSTREAMS = NUM_RX * NUM_STREAMS_PER_RX
N_TXSTREAMS = NUM_TX * NUM_STREAMS_PER_TX
SF = NUM_OFDM_SYMBOLS * FFT_SIZE            # flattened per-stream grid length
LHALF = N_RXSTREAMS * SF                    # flattened (rx, ns_rx, S, fft) length

# resource_grid.effective_subcarrier_ind : indices into the fft axis
EFF_SC_IND = np.arange(2, 2 + NUM_EFF_SC, dtype=np.int32)

# pilot_pattern.mask : [num_tx, num_streams_per_tx, num_ofdm_symbols, num_eff_sc]
_mask = np.zeros((NUM_TX, NUM_STREAMS_PER_TX, NUM_OFDM_SYMBOLS, NUM_EFF_SC), np.int32)
for _t in range(NUM_TX):
    for _s in range(NUM_STREAMS_PER_TX):
        _mask[_t, _s, 1, ((_t * NUM_STREAMS_PER_TX + _s) % 2)::2] = 1
NUM_DATA_SYMBOLS = int(NUM_OFDM_SYMBOLS * NUM_EFF_SC - _mask[0, 0].sum())

# self._data_ind from __init__: stable ascending argsort of the flattened mask,
# keep the first num_data_symbols (data positions, in original order).
DATA_IND = np.argsort(_mask.reshape(NUM_TX, NUM_STREAMS_PER_TX, -1),
                      axis=-1, kind="stable")[..., :NUM_DATA_SYMBOLS].astype(np.int32)

# stream_management.stream_ind : permutation rx-ordered -> tx-ordered streams
STREAM_IND = np.array([0, 2, 1, 3], dtype=np.int32)

ND = NUM_DATA_SYMBOLS
ND_PAD = ((ND + LANE - 1) // LANE) * LANE    # lane-dense per-stream output width
N_OUT = N_TXSTREAMS * ND_PAD                 # kernel output width (lane-dense)


# ------------------------------------------------------------------
# Static index composition -> ONE one-hot selection matrix covering the
# effective-subcarrier gather, the stream permutation and the data gather.
# Built exactly once (host numpy), then kept device-resident.
# ------------------------------------------------------------------
def _build_selection():
    sym = DATA_IND // NUM_EFF_SC                       # ofdm-symbol index
    sc = EFF_SC_IND[DATA_IND % NUM_EFF_SC]             # fft-axis subcarrier
    # source column inside the flattened [rx*ns_rx, S, fft] grid, with the
    # rx-stream row chosen by stream_ind (tx-ordered -> rx-ordered).
    src = (STREAM_IND.reshape(NUM_TX, NUM_STREAMS_PER_TX, 1) * SF
           + sym * FFT_SIZE + sc).reshape(N_TXSTREAMS, ND)
    sel = np.zeros((LHALF, N_OUT), np.float32)
    cols = np.arange(ND)
    for j in range(N_TXSTREAMS):
        sel[src[j], j * ND_PAD + cols] = 1.0           # one nonzero per useful column
    return sel


# Device-resident constant (built once at module/config scope); 0/1 exact in bf16.
SEL = jnp.asarray(_build_selection(), dtype=jnp.bfloat16)     # [LHALF, N_OUT]


# ------------------------------------------------------------------
# Pallas kernel: single invocation.  The whole demap is one gather expressed
# as a one-hot matmul; the f32 LHS is split into three non-overlapping bf16
# planes so DEFAULT-precision bf16 MXU passes reproduce the f32 values exactly
# (each output column selects exactly one input element).
# ------------------------------------------------------------------
def _demap_kernel(x_ref, sel_ref, out_ref):
    x = x_ref[...]                                   # [2B, LHALF] f32 (re rows || im rows)
    sel = sel_ref[...]                               # [LHALF, N_OUT] bf16, exact 0/1

    hi = x.astype(jnp.bfloat16)                      # top 8 mantissa bits
    r1 = x - hi.astype(jnp.float32)
    mid = r1.astype(jnp.bfloat16)                    # next 8 bits
    lo = (r1 - mid.astype(jnp.float32)).astype(jnp.bfloat16)   # remaining bits

    acc = jnp.dot(hi, sel, preferred_element_type=jnp.float32)
    acc = acc + jnp.dot(mid, sel, preferred_element_type=jnp.float32)
    acc = acc + jnp.dot(lo, sel, preferred_element_type=jnp.float32)
    out_ref[...] = acc                               # lane-dense [2B, N_OUT] store


@jax.jit
def resource_grid_demap(y):
    """Pallas implementation of ResourceGridDemapper.forward.

    y : complex64 [batch, num_rx, num_streams_per_rx, num_ofdm_symbols, fft_size]
    returns complex64 [batch, num_tx, num_streams_per_tx, num_data_symbols]
    """
    B = y.shape[0]

    # Natural layout kept; re/im extraction + contiguous flatten is the only
    # wrapper-side data movement (fused by XLA, ~2*B*LHALF*4 bytes total).
    re = jnp.real(y).reshape(B, LHALF)
    im = jnp.imag(y).reshape(B, LHALF)
    x = jnp.concatenate([re, im], axis=0)            # [2B, LHALF], one kernel input

    flops = 3 * 2 * (2 * B) * LHALF * N_OUT           # 3 honest bf16 MXU passes
    bytes_accessed = (2 * B * LHALF * 4               # input slab
                      + LHALF * N_OUT * 2             # bf16 selection
                      + 2 * B * N_OUT * 4)            # output

    out = pl.pallas_call(
        _demap_kernel,
        out_shape=jax.ShapeDtypeStruct((2 * B, N_OUT), jnp.float32),
        in_specs=[
            pl.BlockSpec((2 * B, LHALF), lambda: (0, 0)),
            pl.BlockSpec((LHALF, N_OUT), lambda: (0, 0)),
        ],
        out_specs=pl.BlockSpec((2 * B, N_OUT), lambda: (0, 0)),
        compiler_params=pltpu.CompilerParams(vmem_limit_bytes=16 * 1024 * 1024),
        cost_estimate=pl.CostEstimate(flops=flops, transcendentals=0,
                                      bytes_accessed=bytes_accessed),
    )(x, SEL)

    # Only tiny (<= 32 KB) ops remain: reshape, slice off padding lanes, complex().
    out = out.reshape(2, B, N_TXSTREAMS, ND_PAD)[..., :ND]
    cplx = lax.complex(out[0], out[1])                # [B, n_txstreams, ND]
    return cplx.reshape(B, NUM_TX, NUM_STREAMS_PER_TX, ND)


# ------------------------------------------------------------------
# Pure numpy reference mirroring the PyTorch forward (for verification).
# ------------------------------------------------------------------
def reference_demap(y):
    y = np.asarray(y)
    y = y[..., None]                                     # add data_dim
    y = np.take(y, EFF_SC_IND, axis=-2)                  # gather effective subcarriers
    y = np.transpose(y, (1, 2, 3, 4, 5, 0))              # batch to last
    y = y.reshape((-1,) + y.shape[2:])                   # flatten (num_rx, ns_rx)
    y = y[STREAM_IND]                                    # reorder streams to tx order
    y = y.reshape((NUM_TX, NUM_STREAMS_PER_TX) + y.shape[1:])
    y = y.reshape(y.shape[:2] + (-1,) + y.shape[4:])     # flatten (S, num_eff_sc)
    gathered = np.empty((NUM_TX, NUM_STREAMS_PER_TX, NUM_DATA_SYMBOLS) + y.shape[3:],
                        dtype=y.dtype)
    for t in range(NUM_TX):
        for s in range(NUM_STREAMS_PER_TX):
            gathered[t, s] = y[t, s][DATA_IND[t, s]]
    y = np.transpose(gathered, (4, 0, 1, 2, 3))
    if y.shape[-1] == 1:
        y = y[..., 0]
    return y


if __name__ == "__main__":
    key = jax.random.PRNGKey(0)
    kr, ki = jax.random.split(key)
    shape = (BATCH, NUM_RX, NUM_STREAMS_PER_RX, NUM_OFDM_SYMBOLS, FFT_SIZE)
    y = (jax.random.normal(kr, shape, jnp.float32)
         + 1j * jax.random.normal(ki, shape, jnp.float32)).astype(jnp.complex64)

    out = jax.block_until_ready(resource_grid_demap(y))

    ref = reference_demap(np.asarray(y))
    assert out.shape == ref.shape == (BATCH, NUM_TX, NUM_STREAMS_PER_TX, NUM_DATA_SYMBOLS)
    np.testing.assert_allclose(np.asarray(out), ref, rtol=1e-5, atol=1e-5)
    print("KERNEL_OK")
</pallas_src>

<mosaic_0001>
module attributes {stable_mosaic.version = 11 : i64} {
  func.func @_demap_kernel(%arg0: memref<16x256xf32, #tpu.memory_space<vmem>>, %arg1: memref<256x512xbf16, #tpu.memory_space<vmem>>, %arg2: memref<16x512xf32, #tpu.memory_space<vmem>>) attributes {dimension_semantics = [], scalar_prefetch = 0 : i64, scratch_operands = 0 : i64, tpu.core_type = #tpu.core_type<tc>} {
    %c0 = arith.constant 0 : index
    %c0_0 = arith.constant 0 : index
    %0 = vector.load %arg0[%c0, %c0_0] : memref<16x256xf32, #tpu.memory_space<vmem>>, vector<16x256xf32>
    %c0_1 = arith.constant 0 : index
    %c0_2 = arith.constant 0 : index
    %1 = vector.load %arg1[%c0_1, %c0_2] : memref<256x512xbf16, #tpu.memory_space<vmem>>, vector<256x512xbf16>
    %2 = arith.truncf %0 : vector<16x256xf32> to vector<16x256xbf16>
    %3 = arith.extf %2 : vector<16x256xbf16> to vector<16x256xf32>
    %4 = arith.subf %0, %3 : vector<16x256xf32>
    %5 = arith.truncf %4 : vector<16x256xf32> to vector<16x256xbf16>
    %6 = arith.extf %5 : vector<16x256xbf16> to vector<16x256xf32>
    %7 = arith.subf %4, %6 : vector<16x256xf32>
    %8 = arith.truncf %7 : vector<16x256xf32> to vector<16x256xbf16>
    %cst = arith.constant dense<0.000000e+00> : vector<16x512xf32>
    %9 = tpu.matmul %2, %1, %cst {dimension_numbers = #tpu.dot_dimension_numbers<[1], [0], [0], [1], [0, 0, 1, 1], [], []>} : vector<16x256xbf16>, vector<256x512xbf16>, vector<16x512xf32> -> vector<16x512xf32>
    %cst_3 = arith.constant dense<0.000000e+00> : vector<16x512xf32>
    %10 = tpu.matmul %5, %1, %cst_3 {dimension_numbers = #tpu.dot_dimension_numbers<[1], [0], [0], [1], [0, 0, 1, 1], [], []>} : vector<16x256xbf16>, vector<256x512xbf16>, vector<16x512xf32> -> vector<16x512xf32>
    %11 = arith.addf %9, %10 : vector<16x512xf32>
    %cst_4 = arith.constant dense<0.000000e+00> : vector<16x512xf32>
    %12 = tpu.matmul %8, %1, %cst_4 {dimension_numbers = #tpu.dot_dimension_numbers<[1], [0], [0], [1], [0, 0, 1, 1], [], []>} : vector<16x256xbf16>, vector<256x512xbf16>, vector<16x512xf32> -> vector<16x512xf32>
    %13 = arith.addf %11, %12 : vector<16x512xf32>
    %c0_5 = arith.constant 0 : index
    %c0_6 = arith.constant 0 : index
    %14 = vector.load %arg2[%c0_5, %c0_6] : memref<16x512xf32, #tpu.memory_space<vmem>>, vector<16x512xf32>
    tpu.vector_store %arg2[%c0_5, %c0_6], %13 {strides = array<i32>} : memref<16x512xf32, #tpu.memory_space<vmem>>, vector<16x512xf32>,
    return
  }
}

</mosaic_0001>

<bundles_post_ra>
// kernel: custom-call
= control target key start
LH: loop header
LB: loop body
LE: loop exit
PB: predicated region body
PF: predicated region fallthrough
CT: control target
= control target key end

     0   :  { %2 = vsyncpa [#allocation0], 0  ;;  %s55_s0 = inlined_call_operand.hbm [shape: c64[8,2,2,4,16], index: 0, kind: input, shape index: {}]   ;;  %s56_s1 = inlined_call_operand.vmem [shape: f32[8,2,2,4,16], index: 1, kind: output, shape index: {}]  }
   0x1   :  { %s4_s8 = sshll.u32 %s55_s0, 4  ;;  %s6_s11 = sshll.u32 %s56_s1, 4  ;;  %s5_s8 = int_to_ptr.hbm [resolvable:$true] %s4_s8  ;;  %s7_s11 = int_to_ptr.vmem [resolvable:$true] %s6_s11 }
   0x2   :  { %9 = dma.hbm_to_vmem [thread:$0]  %s5_s8, 2048, %s7_s11, [#allocation0] }
   0x3   :  { %37 = dma.done.wait [#allocation0], 2048  }
   0x4   :  { %38 = vsyncadd [#allocation0], 4294965248 }
   0x5   :  { %12 = vsyncpa [#allocation0], 1 }

// kernel: custom-call.1
= control target key start
LH: loop header
LB: loop body
LE: loop exit
PB: predicated region body
PF: predicated region fallthrough
CT: control target
= control target key end

     0   :  { %s56_s0 = inlined_call_operand.hbm [shape: c64[8,2,2,4,16], index: 0, kind: input, shape index: {}]   ;;  %s57_s1 = inlined_call_operand.vmem [shape: f32[8,2,2,4,16], index: 1, kind: output, shape index: {}]  }
   0x1   :  { %s2_s8 = scalar_lea.hbm %s56_s0, 128 }
   0x2   :  { %3 = vsyncpa [#allocation0], 0  ;;  %s5_s9 = sshll.u32 %s2_s8, 4  ;;  %s7_s12 = sshll.u32 %s57_s1, 4  ;;  %s6_s9 = int_to_ptr.hbm [resolvable:$true] %s5_s9  ;;  %s8_s12 = int_to_ptr.vmem [resolvable:$true] %s7_s12 }
   0x3   :  { %10 = dma.hbm_to_vmem [thread:$0]  %s6_s9, 2048, %s8_s12, [#allocation0] }
   0x4   :  { %38 = dma.done.wait [#allocation0], 2048  }
   0x5   :  { %39 = vsyncadd [#allocation0], 4294965248 }
   0x6   :  { %13 = vsyncpa [#allocation0], 1 }

// kernel: custom-call.2
= control target key start
LH: loop header
LB: loop body
LE: loop exit
PB: predicated region body
PF: predicated region fallthrough
CT: control target
= control target key end

     0   :  { %s105_s0 = inlined_call_operand.vmem [shape: f32[8,2,2,42], index: 0, kind: input, shape index: {}]   ;;  %s106_s1 = inlined_call_operand.vmem [shape: f32[8,2,2,42], index: 1, kind: input, shape index: {}]   ;;  %s107_s2 = inlined_call_operand.hbm [shape: c64[8,2,2,42], index: 2, kind: output, shape index: {}]  }
   0x1   :  { %s3_s11 = scalar_lea.hbm %s107_s2, 32 }
   0x2   :  { %4 = vsyncpa [#allocation0], 0  ;;  %s6_s14 = sshll.u32 %s105_s0, 4  ;;  %s8_s17 = sshll.u32 %s107_s2, 4  ;;  %s7_s14 = int_to_ptr.vmem [resolvable:$true] %s6_s14  ;;  %s9_s17 = int_to_ptr.hbm [resolvable:$true] %s8_s17 }
   0x3   :  { %11 = dma.vmem_to_hbm [thread:$0]  %s7_s14, 512, %s9_s17, [#allocation0] }
   0x4   :  { %74 = dma.done.wait [#allocation0], 512  }
   0x5   :  { %75 = vsyncadd [#allocation0], 4294966784 }
   0x6   :  { %14 = vsyncpa [#allocation0], 1 }
   0x7   :  { %15 = vsyncpa [#allocation1], 0  ;;  %s17_s20 = sshll.u32 %s106_s1, 4  ;;  %s19_s21 = sshll.u32 %s3_s11, 4  ;;  %s18_s20 = int_to_ptr.vmem [resolvable:$true] %s17_s20  ;;  %s20_s21 = int_to_ptr.hbm [resolvable:$true] %s19_s21 }
   0x8   :  { %22 = dma.vmem_to_hbm [thread:$0]  %s18_s20, 512, %s20_s21, [#allocation1] }
   0x9   :  { %76 = dma.done.wait [#allocation1], 512  }
   0xa   :  { %77 = vsyncadd [#allocation1], 4294966784 }
   0xb   :  { %25 = vsyncpa [#allocation1], 1 }

// kernel: resource_grid_demap.1
= control target key start
LH: loop header
LB: loop body
LE: loop exit
PB: predicated region body
PF: predicated region fallthrough
CT: control target
= control target key end

     0   :  { %7 = vsyncpa [#allocation3], 0  ;;  %s1163_s12 = smov [#allocation2]   ;;  %s1164_s14 = smov 256   ;;  %s1583_s0 = inlined_call_operand.vmem [shape: f32[16,256], index: 0, kind: input, shape index: {}]   ;;  %s1584_s1 = inlined_call_operand.hbm [shape: bf16[256,512], index: 1, kind: input, shape index: {}]   ;;  %s1585_s2 = inlined_call_operand.vmem [shape: f32[16,512], index: 2, kind: output, shape index: {}]  }
   0x1   :  { %s14_s11 = sshll.u32 %s1584_s1, 4  ;;  %s16_s13 = sshll.u32 %s1163_s12, 4  ;;  %s15_s11 = int_to_ptr.hbm [resolvable:$true] %s14_s11  ;;  %s17_s13 = int_to_ptr.vmem [resolvable:$true] %s16_s13 }
   0x2   :  { %s1165_s15 = smov 16  }
   0x3   :  { %22 = dma.hbm_to_vmem [thread:$0]  %s15_s11, 8192, %s17_s13, [#allocation3], %s1164_s14, %s1164_s14, %s1165_s15  }
   0x4   :  { %1161 = dma.done.wait [#allocation3], 8192  }
   0x5   :  { %1162 = vsyncadd [#allocation3], 4294959104  ;;  %v928_v0 = vld [vmem:[#allocation2 + $0xe0] sm:$0xf]  ;;  %v1100_v1 = vld [vmem:[#allocation2 + $0xec] sm:$0xf0] }
   0x6   :  { %v1056_v2 = vld [vmem:[#allocation2 + $0x1e0] sm:$0xf]  ;;  %v1184_v3 = vor.u32 %v1100_v1, %v928_v0  ;;  %v1132_v4 = vld [vmem:[#allocation2 + $0x1ec] sm:$0xf0]  ;;  %v1098_v5 = vld [vmem:[#allocation2 + $0xe4] sm:$0xf] }
   0x7   :  { %v930_v6 = vld [vmem:[#allocation2 + $0xf0] sm:$0xf0]  ;;  %v1186_v7 = vor.u32 %v1132_v4, %v1056_v2  ;;  %v1130_v9 = vld [vmem:[#allocation2 + $0x1e4] sm:$0xf]  ;;  %v912_v11 = vld [vmem:[#allocation2 + $0xc0] sm:$0xf] }
   0x8   :  { %v1188_v8 = vor.u32 %v1098_v5, %v930_v6  ;;  %v1058_v10 = vld [vmem:[#allocation2 + $0x1f0] sm:$0xf0]  ;;  %447 = vmatpush.bf16.msra.mxu0 %v1184_v3  ;;  %v1096_v13 = vld [vmem:[#allocation2 + $0xcc] sm:$0xf0]  ;;  %v1040_v14 = vld [vmem:[#allocation2 + $0x1c0] sm:$0xf] }
   0x9   :  { %v1191_v12 = vor.u32 %v1130_v9, %v1058_v10  ;;  %v1128_v15 = vld [vmem:[#allocation2 + $0x1cc] sm:$0xf0]  ;;  %461 = vmatpush.bf16.msra.mxu1 %v1186_v7  ;;  %v1195_v16 = vor.u32 %v1096_v13, %v912_v11  ;;  %v1094_v18 = vld [vmem:[#allocation2 + $0xc4] sm:$0xf]  ;;  %v914_v19 = vld [vmem:[#allocation2 + $0xd0] sm:$0xf0] }
   0xa   :  { %475 = vmatpush.bf16.msra.mxu2 %v1188_v8  ;;  %v1197_v17 = vor.u32 %v1128_v15, %v1040_v14  ;;  %v1126_v20 = vld [vmem:[#allocation2 + $0x1c4] sm:$0xf]  ;;  %v1200_v21 = vor.u32 %v1094_v18, %v914_v19  ;;  %v1042_v22 = vld [vmem:[#allocation2 + $0x1d0] sm:$0xf0]  ;;  %v896_v23 = vld [vmem:[#allocation2 + $0xa0] sm:$0xf] }
   0xb   :  { %489 = vmatpush.bf16.msra.mxu3 %v1191_v12  ;;  %v1092_v24 = vld [vmem:[#allocation2 + $0xac] sm:$0xf0]  ;;  %v1202_v25 = vor.u32 %v1126_v20, %v1042_v22  ;;  %v1024_v26 = vld [vmem:[#allocation2 + $0x1a0] sm:$0xf]  ;;  %v1090_v28 = vld [vmem:[#allocation2 + $0xa4] sm:$0xf] }
   0xc   :  { %v1124_v27 = vld [vmem:[#allocation2 + $0x1ac] sm:$0xf0]  ;;  %448 = vmatpush.bf16.msra.mxu0 %v1195_v16  ;;  %v1205_v29 = vor.u32 %v1092_v24, %v896_v23  ;;  %v898_v30 = vld [vmem:[#allocation2 + $0xb0] sm:$0xf0]  ;;  %v1122_v31 = vld [vmem:[#allocation2 + $0x1a4] sm:$0xf] }
   0xd   :  { %v1026_v32 = vld [vmem:[#allocation2 + $0x1b0] sm:$0xf0]  ;;  %462 = vmatpush.bf16.msra.mxu1 %v1197_v17  ;;  %v1209_v33 = vor.u32 %v1124_v27, %v1024_v26  ;;  %v1211_v34 = vor.u32 %v1090_v28, %v898_v30  ;;  %v880_v35 = vld [vmem:[#allocation2 + $0x80] sm:$0xf]  ;;  %v1088_v36 = vld [vmem:[#allocation2 + $0x8c] sm:$0xf0] }
   0xe   :  { %476 = vmatpush.bf16.msra.mxu2 %v1200_v21  ;;  %v1008_v37 = vld [vmem:[#allocation2 + $0x180] sm:$0xf]  ;;  %v1214_v38 = vor.u32 %v1122_v31, %v1026_v32  ;;  %v1120_v39 = vld [vmem:[#allocation2 + $0x18c] sm:$0xf0]  ;;  %v1086_v40 = vld [vmem:[#allocation2 + $0x84] sm:$0xf]  ;;  %v1217_v44 = vor.u32 %v1088_v36, %v880_v35 }
   0xf   :  { %490 = vmatpush.bf16.msra.mxu3 %v1202_v25  ;;  %v882_v41 = vld [vmem:[#allocation2 + $0x90] sm:$0xf0]  ;;  %v1118_v42 = vld [vmem:[#allocation2 + $0x184] sm:$0xf]  ;;  %v1221_v45 = vor.u32 %v1120_v39, %v1008_v37  ;;  %v864_v47 = vld [vmem:[#allocation2 + $0x60] sm:$0xf] }
  0x10   :  { %v1010_v43 = vld [vmem:[#allocation2 + $0x190] sm:$0xf0]  ;;  %449 = vmatpush.bf16.msra.mxu0 %v1205_v29  ;;  %v1223_v46 = vor.u32 %v1086_v40, %v882_v41  ;;  %v1084_v48 = vld [vmem:[#allocation2 + $0x6c] sm:$0xf0]  ;;  %v992_v49 = vld [vmem:[#allocation2 + $0x160] sm:$0xf] }
  0x11   :  { %463 = vmatpush.bf16.msra.mxu1 %v1209_v33  ;;  %v1226_v50 = vor.u32 %v1118_v42, %v1010_v43  ;;  %v1116_v51 = vld [vmem:[#allocation2 + $0x16c] sm:$0xf0]  ;;  %v1082_v52 = vld [vmem:[#allocation2 + $0x64] sm:$0xf]  ;;  %v866_v53 = vld [vmem:[#allocation2 + $0x70] sm:$0xf0]  ;;  %v1229_v56 = vor.u32 %v1084_v48, %v864_v47 }
  0x12   :  { %477 = vmatpush.bf16.msra.mxu2 %v1211_v34  ;;  %v1114_v54 = vld [vmem:[#allocation2 + $0x164] sm:$0xf]  ;;  %v994_v55 = vld [vmem:[#allocation2 + $0x170] sm:$0xf0]  ;;  %v1233_v57 = vor.u32 %v1116_v51, %v992_v49  ;;  %v1235_v58 = vor.u32 %v1082_v52, %v866_v53  ;;  %v848_v59 = vld [vmem:[#allocation2 + $0x40] sm:$0xf] }
  0x13   :  { %491 = vmatpush.bf16.msra.mxu3 %v1214_v38  ;;  %v1080_v60 = vld [vmem:[#allocation2 + $0x4c] sm:$0xf0]  ;;  %v976_v61 = vld [vmem:[#allocation2 + $0x140] sm:$0xf]  ;;  %v1238_v62 = vor.u32 %v1114_v54, %v994_v55  ;;  %v1078_v0 = vld [vmem:[#allocation2 + $0x44] sm:$0xf] }
  0x14   :  { %450 = vmatpush.bf16.msra.mxu0 %v1217_v44  ;;  %v1112_v63 = vld [vmem:[#allocation2 + $0x14c] sm:$0xf0]  ;;  %v850_v1 = vld [vmem:[#allocation2 + $0x50] sm:$0xf0]  ;;  %v1110_v2 = vld [vmem:[#allocation2 + $0x144] sm:$0xf]  ;;  %v1241_v5 = vor.u32 %v1080_v60, %v848_v59 }
  0x15   :  { %464 = vmatpush.bf16.msra.mxu1 %v1221_v45  ;;  %v978_v4 = vld [vmem:[#allocation2 + $0x150] sm:$0xf0]  ;;  %v1245_v6 = vor.u32 %v1112_v63, %v976_v61  ;;  %v1247_v9 = vor.u32 %v1078_v0, %v850_v1  ;;  %v832_v10 = vld [vmem:[#allocation2 + $0x20] sm:$0xf]  ;;  %v1076_v11 = vld [vmem:[#allocation2 + $0x2c] sm:$0xf0] }
  0x16   :  { %478 = vmatpush.bf16.msra.mxu2 %v1223_v46  ;;  %v960_v13 = vld [vmem:[#allocation2 + $0x120] sm:$0xf]  ;;  %v1250_v14 = vor.u32 %v1110_v2, %v978_v4  ;;  %v1108_v15 = vld [vmem:[#allocation2 + $0x12c] sm:$0xf0]  ;;  %v1074_v18 = vld [vmem:[#allocation2 + $0x24] sm:$0xf]  ;;  %v1253_v23 = vor.u32 %v1076_v11, %v832_v10 }
  0x17   :  { %492 = vmatpush.bf16.msra.mxu3 %v1226_v50  ;;  %v834_v19 = vld [vmem:[#allocation2 + $0x30] sm:$0xf0]  ;;  %v1106_v20 = vld [vmem:[#allocation2 + $0x124] sm:$0xf]  ;;  %v816_v24 = vld [vmem:[#allocation2] sm:$0xf]  ;;  %v1257_v27 = vor.u32 %v1108_v15, %v960_v13 }
  0x18   :  { %451 = vmatpush.bf16.msra.mxu0 %v1229_v56  ;;  %v962_v22 = vld [vmem:[#allocation2 + $0x130] sm:$0xf0]  ;;  %v1072_v26 = vld [vmem:[#allocation2 + $0xc] sm:$0xf0]  ;;  %v1259_v28 = vor.u32 %v1074_v18, %v834_v19  ;;  %v944_v30 = vld [vmem:[#allocation2 + $0x100] sm:$0xf] }
  0x19   :  { %465 = vmatpush.bf16.msra.mxu1 %v1233_v57  ;;  %v1104_v31 = vld [vmem:[#allocation2 + $0x10c] sm:$0xf0]  ;;  %v1070_v32 = vld [vmem:[#allocation2 + $0x4] sm:$0xf]  ;;  %v1262_v35 = vor.u32 %v1106_v20, %v962_v22  ;;  %v818_v36 = vld [vmem:[#allocation2 + $0x10] sm:$0xf0]  ;;  %v1265_v43 = vor.u32 %v1072_v26, %v816_v24 }
  0x1a   :  { %479 = vmatpush.bf16.msra.mxu2 %v1235_v58  ;;  %v1102_v37 = vld [vmem:[#allocation2 + $0x104] sm:$0xf]  ;;  %v946_v39 = vld [vmem:[#allocation2 + $0x110] sm:$0xf0]  ;;  %v936_v40 = vld [vmem:[#allocation2 + $0xe8] sm:$0xf]  ;;  %v1269_v51 = vor.u32 %v1104_v31, %v944_v30  ;;  %v1271_v52 = vor.u32 %v1070_v32, %v818_v36 }
  0x1b   :  { %493 = vmatpush.bf16.msra.mxu3 %v1238_v62  ;;  %v1101_v41 = vld [vmem:[#allocation2 + $0xf4] sm:$0xf0]  ;;  %v1064_v42 = vld [vmem:[#allocation2 + $0x1e8] sm:$0xf]  ;;  %v1099_v48 = vld [vmem:[#allocation2 + $0xec] sm:$0xf]  ;;  %v1274_v55 = vor.u32 %v1102_v37, %v946_v39 }
  0x1c   :  { %452 = vmatpush.bf16.msra.mxu0 %v1241_v5  ;;  %v1133_v47 = vld [vmem:[#allocation2 + $0x1f4] sm:$0xf0]  ;;  %v938_v49 = vld [vmem:[#allocation2 + $0xf8] sm:$0xf0]  ;;  %v1131_v53 = vld [vmem:[#allocation2 + $0x1ec] sm:$0xf]  ;;  %v1276_v59 = vor.u32 %v1101_v41, %v936_v40 }
  0x1d   :  { %466 = vmatpush.bf16.msra.mxu1 %v1245_v6  ;;  %v1066_v54 = vld [vmem:[#allocation2 + $0x1f8] sm:$0xf0]  ;;  %v1278_v60 = vor.u32 %v1133_v47, %v1064_v42  ;;  %v1280_v61 = vor.u32 %v1099_v48, %v938_v49  ;;  %v920_v63 = vld [vmem:[#allocation2 + $0xc8] sm:$0xf]  ;;  %v1097_v0 = vld [vmem:[#allocation2 + $0xd4] sm:$0xf0] }
  0x1e   :  { %480 = vmatpush.bf16.msra.mxu2 %v1247_v9  ;;  %v1048_v1 = vld [vmem:[#allocation2 + $0x1c8] sm:$0xf]  ;;  %v1283_v2 = vor.u32 %v1131_v53, %v1066_v54  ;;  %v1129_v4 = vld [vmem:[#allocation2 + $0x1d4] sm:$0xf0]  ;;  %v1095_v10 = vld [vmem:[#allocation2 + $0xcc] sm:$0xf]  ;;  %v1289_v18 = vor.u32 %v1097_v0, %v920_v63 }
  0x1f   :  { %494 = vmatpush.bf16.msra.mxu3 %v1250_v14  ;;  %1624 = vst [vmem:[#allocation5_spill] sm:$0xff] %v1280_v61  ;;  %v922_v11 = vld [vmem:[#allocation2 + $0xd8] sm:$0xf0]  ;;  %v1127_v13 = vld [vmem:[#allocation2 + $0x1cc] sm:$0xf]  ;;  %v1293_v20 = vor.u32 %v1129_v4, %v1048_v1  ;;  %v27_v48 = vld [vmem:[%s1583_s0] sm:$0xff] }
  0x20   :  { %453 = vmatpush.bf16.msra.mxu0 %v1253_v23  ;;  %1625 = vst [vmem:[#allocation6_spill] sm:$0xff] %v1283_v2  ;;  %v1050_v15 = vld [vmem:[#allocation2 + $0x1d8] sm:$0xf0]  ;;  %v904_v19 = vld [vmem:[#allocation2 + $0xa8] sm:$0xf]  ;;  %v1295_v22 = vor.u32 %v1095_v10, %v922_v11  ;;  %v29_v0 = vld [vmem:[%s1583_s0 + $0x10] sm:$0xff] }
  0x21   :  { %467 = vmatpush.bf16.msra.mxu1 %v1257_v27  ;;  %1626 = vst [vmem:[#allocation7_spill] sm:$0xff] %v1289_v18  ;;  %v1093_v24 = vld [vmem:[#allocation2 + $0xb4] sm:$0xf0]  ;;  %v1032_v26 = vld [vmem:[#allocation2 + $0x1a8] sm:$0xf]  ;;  %v1298_v31 = vor.u32 %v1127_v13, %v1050_v15 }
  0x22   :  { %481 = vmatpush.bf16.msra.mxu2 %v1259_v28  ;;  %1627 = vst [vmem:[#allocation8_spill] sm:$0xff] %v1293_v20  ;;  %v1125_v30 = vld [vmem:[#allocation2 + $0x1b4] sm:$0xf0]  ;;  %v1091_v32 = vld [vmem:[#allocation2 + $0xac] sm:$0xf]  ;;  %v1301_v42 = vor.u32 %v1093_v24, %v904_v19 }
  0x23   :  { %495 = vmatpush.bf16.msra.mxu3 %v1262_v35  ;;  %1628 = vst [vmem:[#allocation9_spill] sm:$0xff] %v1295_v22  ;;  %v906_v36 = vld [vmem:[#allocation2 + $0xb8] sm:$0xf0]  ;;  %v1123_v37 = vld [vmem:[#allocation2 + $0x1ac] sm:$0xf]  ;;  %v1311_v53 = vor.u32 %v1125_v30, %v1032_v26 }
  0x24   :  { %454 = vmatpush.bf16.msra.mxu0 %v1265_v43  ;;  %1629 = vst [vmem:[#allocation10_spill] sm:$0xff] %v1298_v31  ;;  %v1034_v39 = vld [vmem:[#allocation2 + $0x1b8] sm:$0xf0]  ;;  %v888_v40 = vld [vmem:[#allocation2 + $0x88] sm:$0xf]  ;;  %v1313_v54 = vor.u32 %v1091_v32, %v906_v36 }
  0x25   :  { %468 = vmatpush.bf16.msra.mxu1 %v1269_v51  ;;  %v1089_v41 = vld [vmem:[#allocation2 + $0x94] sm:$0xf0]  ;;  %1630 = vst [vmem:[#allocation11_spill] sm:$0xff] %v1301_v42  ;;  %v1016_v47 = vld [vmem:[#allocation2 + $0x188] sm:$0xf]  ;;  %v1324_v10 = vor.u32 %v1123_v37, %v1034_v39 }
  0x26   :  { %482 = vmatpush.bf16.msra.mxu2 %v1271_v52  ;;  %v28_v49 = vld [vmem:[%s1583_s0 + $0x8] sm:$0xff]  ;;  %1631 = vst [vmem:[#allocation12_spill] sm:$0xff] %v1311_v53  ;;  %v1121_v63 = vld [vmem:[#allocation2 + $0x194] sm:$0xf0]  ;;  %v890_v13 = vld [vmem:[#allocation2 + $0x98] sm:$0xf0]  ;;  %v1331_v32 = vor.u32 %v1089_v41, %v888_v40 }
  0x27   :  { %496 = vmatpush.bf16.msra.mxu3 %v1274_v55  ;;  %1632 = vst [vmem:[#allocation13_spill] sm:$0xff] %v1313_v54  ;;  %v30_v1 = vld [vmem:[%s1583_s0 + $0x18] sm:$0xff]  ;;  %v1321_v4 = vpack.c.bf16 %v28_v49, %v27_v48  ;;  %v1087_v11 = vld [vmem:[#allocation2 + $0x8c] sm:$0xf]  ;;  %v1333_v36 = vor.u32 %v1121_v63, %v1016_v47 }
  0x28   :  { %503 = vmatpush.bf16.msrb.mxu0 %v1276_v59  ;;  %v1326_v15 = vpack.c.bf16 %v30_v1, %v29_v0  ;;  %v1119_v19 = vld [vmem:[#allocation2 + $0x18c] sm:$0xf]  ;;  %v1018_v24 = vld [vmem:[#allocation2 + $0x198] sm:$0xf0]  ;;  %v1339_v39 = vor.u32 %v1087_v11, %v890_v13  ;;  %v1117_v41 = vld [vmem:[#allocation2 + $0x174] sm:$0xf0] }
  0x29   :  { %517 = vmatpush.bf16.msrb.mxu1 %v1278_v60  ;;  %v97_v26 = vunpack.c.l.bf16 %v1321_v4  ;;  %v98_v30 = vunpack.c.h.bf16 %v1321_v4  ;;  %v1346_v40 = vor.u32 %v1119_v19, %v1018_v24  ;;  %v1083_v47 = vld [vmem:[#allocation2 + $0x6c] sm:$0xf]  ;;  %v874_v63 = vld [vmem:[#allocation2 + $0x78] sm:$0xf0]  ;;  %v1081_v19 = vld [vmem:[#allocation2 + $0x54] sm:$0xf0] }
  0x2a   :  { %531 = vmatpush.bf16.msrb.mxu2 %v1280_v61  ;;  %v100_v37 = vunpack.c.h.bf16 %v1326_v15  ;;  %1633 = vst [vmem:[#allocation14_spill] sm:$0xff] %v1339_v39  ;;  %v1115_v11 = vld [vmem:[#allocation2 + $0x16c] sm:$0xf]  ;;  %v1002_v13 = vld [vmem:[#allocation2 + $0x178] sm:$0xf0] }
  0x2b   :  { %545 = vmatpush.bf16.msrb.mxu3 %v1283_v2  ;;  %v1341_v2 = vsub.f32 %v27_v48, %v97_v26  ;;  %1636 = vst [vmem:[#allocation17_spill] sm:$0xff] %v1346_v40  ;;  %v984_v24 = vld [vmem:[#allocation2 + $0x148] sm:$0xf] }
  0x2c   :  { %504 = vmatpush.bf16.msrb.mxu0 %v1289_v18  ;;  %v1000_v18 = vld [vmem:[#allocation2 + $0x168] sm:$0xf] }
  0x2d   :  { %518 = vmatpush.bf16.msrb.mxu1 %v1293_v20  ;;  %v1085_v20 = vld [vmem:[#allocation2 + $0x74] sm:$0xf0]  ;;  %1634 = vst [vmem:[#allocation15_spill] sm:$0xff] %v1341_v2 }
  0x2e   :  { %532 = vmatpush.bf16.msrb.mxu2 %v1295_v22  ;;  %v872_v22 = vld [vmem:[#allocation2 + $0x68] sm:$0xf] }
  0x2f   :  { %546 = vmatpush.bf16.msrb.mxu3 %v1298_v31  ;;  %v99_v31 = vunpack.c.l.bf16 %v1326_v15  ;;  %v1357_v48 = vor.u32 %v1085_v20, %v872_v22  ;;  %v1372_v22 = vor.u32 %v1115_v11, %v1002_v13 }
  0x30   :  { %505 = vmatpush.bf16.msrb.mxu0 %v1301_v42  ;;  %v1343_v42 = vsub.f32 %v28_v49, %v98_v30  ;;  %v1113_v30 = vld [vmem:[#allocation2 + $0x154] sm:$0xf0] }
  0x31   :  { %519 = vmatpush.bf16.msrb.mxu1 %v1311_v53  ;;  %v1348_v61 = vsub.f32 %v29_v0, %v99_v31  ;;  %v1350_v53 = vsub.f32 %v30_v1, %v100_v37  ;;  %v1365_v31 = vor.u32 %v1117_v41, %v1000_v18  ;;  %v1367_v0 = vor.u32 %v1083_v47, %v874_v63  ;;  %v856_v1 = vld [vmem:[#allocation2 + $0x48] sm:$0xf]  ;;  %v1079_v37 = vld [vmem:[#allocation2 + $0x4c] sm:$0xf]  ;;  %v986_v47 = vld [vmem:[#allocation2 + $0x158] sm:$0xf0] }
  0x32   :  { %533 = vmatpush.bf16.msrb.mxu2 %v1313_v54  ;;  %1635 = vst [vmem:[#allocation16_spill] sm:$0xff] %v1343_v42  ;;  %v1354_v54 = vpack.c.bf16 %v1343_v42, %v1341_v2  ;;  %v1111_v41 = vld [vmem:[#allocation2 + $0x14c] sm:$0xf]  ;;  %v1377_v63 = vor.u32 %v1081_v19, %v856_v1  ;;  %v1381_v11 = vor.u32 %v1113_v30, %v984_v24  ;;  %v1109_v1 = vld [vmem:[#allocation2 + $0x134] sm:$0xf0] }
  0x33   :  { %547 = vmatpush.bf16.msrb.mxu3 %v1324_v10  ;;  %1637 = vst [vmem:[#allocation18_spill] sm:$0xff] %v1348_v61  ;;  %v1361_v49 = vpack.c.bf16 %v1350_v53, %v1348_v61  ;;  %v1075_v19 = vld [vmem:[#allocation2 + $0x2c] sm:$0xf] }
  0x34   :  { %1638 = vst [vmem:[#allocation19_spill] sm:$0xff] %v1350_v53  ;;  %506 = vmatpush.bf16.msrb.mxu0 %v1331_v32  ;;  %v119_v26 = vunpack.c.l.b16 %v1354_v54  ;;  %v120_v20 = vunpack.c.h.b16 %v1354_v54  ;;  %v858_v53 = vld [vmem:[#allocation2 + $0x58] sm:$0xf0] }
  0x35   :  { %1639 = vst [vmem:[#allocation20_spill] sm:$0xff] %v1354_v54  ;;  %520 = vmatpush.bf16.msrb.mxu1 %v1333_v36  ;;  %v121_v42 = vunpack.c.l.b16 %v1361_v49  ;;  %v122_v18 = vunpack.c.h.b16 %v1361_v49  ;;  %v1383_v13 = vor.u32 %v1079_v37, %v858_v53  ;;  %v840_v54 = vld [vmem:[#allocation2 + $0x28] sm:$0xf] }
  0x36   :  { %1640 = vst [vmem:[#allocation21_spill] sm:$0xff] %v1361_v49  ;;  %534 = vmatpush.bf16.msrb.mxu2 %v1339_v39  ;;  %v968_v39 = vld [vmem:[#allocation2 + $0x128] sm:$0xf]  ;;  %v1386_v49 = vor.u32 %v1111_v41, %v986_v47 }
  0x37   :  { %1641 = vst [vmem:[#allocation22_spill] sm:$0xff] %v1367_v0  ;;  %548 = vmatpush.bf16.msrb.mxu3 %v1346_v40  ;;  %v123_v61 = vpack.c.b16 %v121_v42, %v119_v26  ;;  %v124_v2 = vpack.c.b16 %v122_v18, %v120_v20  ;;  %v1077_v40 = vld [vmem:[#allocation2 + $0x34] sm:$0xf0]  ;;  %v842_v42 = vld [vmem:[#allocation2 + $0x38] sm:$0xf0]  ;;  %v1393_v53 = vor.u32 %v1109_v1, %v968_v39 }
  0x38   :  { %1642 = vst [vmem:[#allocation23_spill] sm:$0xff] %v1372_v22  ;;  %507 = vmatpush.bf16.msrb.mxu0 %v1357_v48  ;;  %v1107_v26 = vld [vmem:[#allocation2 + $0x12c] sm:$0xf]  ;;  %v970_v20 = vld [vmem:[#allocation2 + $0x138] sm:$0xf0]  ;;  %v1389_v24 = vor.u32 %v1077_v40, %v840_v54  ;;  %v1395_v30 = vor.u32 %v1075_v19, %v842_v42 }
  0x39   :  { %1643 = vst [vmem:[#allocation24_spill] sm:$0xff] %v1377_v63  ;;  %521 = vmatpush.bf16.msrb.mxu1 %v1365_v31  ;;  %483 = vmatmul.bf16.vlgmr.msra.gmra.mxu2 %v123_v61  ;;  %v824_v37 = vld [vmem:[#allocation2 + $0x8] sm:$0xf]  ;;  %v1073_v18 = vld [vmem:[#allocation2 + $0x14] sm:$0xf0]  ;;  %v1398_v47 = vor.u32 %v1107_v26, %v970_v20  ;;  %v1645_v26 = vld [vmem:[#allocation5_spill] sm:$0xff] }
  0x3a   :  { %535 = vmatpush.bf16.msrb.mxu2 %v1367_v0  ;;  %1644 = vst [vmem:[#allocation25_spill] sm:$0xff] %v1381_v11  ;;  %497 = vmatmul.bf16.vlgmr.msra.gmra.mxu3 %v124_v2  ;;  %v952_v41 = vld [vmem:[#allocation2 + $0x108] sm:$0xf]  ;;  %v826_v54 = vld [vmem:[#allocation2 + $0x18] sm:$0xf0] }
  0x3b   :  { %549 = vmatpush.bf16.msrb.mxu3 %v1372_v22  ;;  %455 = vmatmul.bf16.vlgmr.msra.gmra.mxu0 %v123_v61  ;;  %v1105_v22 = vld [vmem:[#allocation2 + $0x114] sm:$0xf0]  ;;  %v1103_v40 = vld [vmem:[#allocation2 + $0x10c] sm:$0xf]  ;;  %v954_v0 = vld [vmem:[#allocation2 + $0x118] sm:$0xf0] }
  0x3c   :  { %508 = vmatpush.bf16.msrb.mxu0 %v1377_v63  ;;  %469 = vmatmul.bf16.vlgmr.msra.gmra.mxu1 %v124_v2  ;;  %v1071_v63 = vld [vmem:[#allocation2 + $0xc] sm:$0xf]  ;;  %v1405_v39 = vor.u32 %v1105_v22, %v952_v41  ;;  %v1410_v19 = vor.u32 %v1103_v40, %v954_v0  ;;  %v562_v0 = vunpack.c.h.b16 %v1321_v4  ;;  %v564_v22 = vunpack.c.h.b16 %v1326_v15  ;;  %v1648_v20 = vld [vmem:[#allocation8_spill] sm:$0xff]  ;;  %v1651_v41 = vld [vmem:[#allocation11_spill] sm:$0xff] }
  0x3d   :  { %522 = vmatpush.bf16.msrb.mxu1 %v1381_v11  ;;  %v1401_v11 = vor.u32 %v1073_v18, %v824_v37  ;;  %v1407_v1 = vor.u32 %v1071_v63, %v826_v54  ;;  %v1649_v37 = vld [vmem:[#allocation9_spill] sm:$0xff]  ;;  %v1650_v18 = vld [vmem:[#allocation10_spill] sm:$0xff]  ;;  %v1652_v54 = vld [vmem:[#allocation12_spill] sm:$0xff] }
  0x3e   :  { %536 = vmatpush.bf16.msrb.mxu2 %v1383_v13  ;;  %v566_v42 = vpack.c.b16 %v564_v22, %v562_v0  ;;  %v1653_v40 = vld [vmem:[#allocation13_spill] sm:$0xff]  ;;  %v1656_v0 = vld [vmem:[#allocation22_spill] sm:$0xff] }
  0x3f   :  { %550 = vmatpush.bf16.msrb.mxu3 %v1386_v49  ;;  %v1657_v22 = vld [vmem:[#allocation23_spill] sm:$0xff] }
  0x40   :  { %509 = vmatpush.bf16.msrb.mxu0 %v1389_v24 }
  0x41   :  { %523 = vmatpush.bf16.msrb.mxu1 %v1393_v53 }
  0x42   :  { %537 = vmatpush.bf16.msrb.mxu2 %v1395_v30 }
  0x43   :  { %551 = vmatpush.bf16.msrb.mxu3 %v1398_v47 }
  0x44   :  { %510 = vmatpush.bf16.msrb.mxu0 %v1401_v11 }
  0x45   :  { %524 = vmatpush.bf16.msrb.mxu1 %v1405_v39 }
  0x46   :  { %538 = vmatpush.bf16.msrb.mxu2 %v1407_v1 }
  0x47   :  { %552 = vmatpush.bf16.msrb.mxu3 %v1410_v19 }
  0x48   :  { %569 = vmatpush.bf16.msra.mxu0 %v1184_v3 }
  0x49   :  { %583 = vmatpush.bf16.msra.mxu1 %v1186_v7  ;;  %539 = vmatmul.bf16.vlgmr.msrb.gmra.mxu2 %v123_v61 }
  0x4a   :  { %597 = vmatpush.bf16.msra.mxu2 %v1188_v8  ;;  %553 = vmatmul.bf16.vlgmr.msrb.gmra.mxu3 %v124_v2 }
  0x4b   :  { %611 = vmatpush.bf16.msra.mxu3 %v1191_v12  ;;  %511 = vmatmul.bf16.vlgmr.msrb.gmra.mxu0 %v123_v61  ;;  %v561_v61 = vunpack.c.l.b16 %v1321_v4  ;;  %v1646_v4 = vld [vmem:[#allocation6_spill] sm:$0xff] }
  0x4c   :  { %570 = vmatpush.bf16.msra.mxu0 %v1195_v16  ;;  %525 = vmatmul.bf16.vlgmr.msrb.gmra.mxu1 %v124_v2  ;;  %v563_v2 = vunpack.c.l.b16 %v1326_v15  ;;  %v1647_v15 = vld [vmem:[#allocation7_spill] sm:$0xff] }
  0x4d   :  { %584 = vmatpush.bf16.msra.mxu1 %v1197_v17 }
  0x4e   :  { %598 = vmatpush.bf16.msra.mxu2 %v1200_v21  ;;  %v565_v63 = vpack.c.b16 %v563_v2, %v561_v61  ;;  %v1654_v61 = vld [vmem:[#allocation14_spill] sm:$0xff]  ;;  %v1655_v2 = vld [vmem:[#allocation17_spill] sm:$0xff] }
  0x4f   :  { %612 = vmatpush.bf16.msra.mxu3 %v1202_v25 }
  0x50   :  { %571 = vmatpush.bf16.msra.mxu0 %v1205_v29 }
  0x51   :  { %585 = vmatpush.bf16.msra.mxu1 %v1209_v33 }
  0x52   :  { %599 = vmatpush.bf16.msra.mxu2 %v1211_v34 }
  0x53   :  { %613 = vmatpush.bf16.msra.mxu3 %v1214_v38 }
  0x54   :  { %572 = vmatpush.bf16.msra.mxu0 %v1217_v44 }
  0x55   :  { %586 = vmatpush.bf16.msra.mxu1 %v1221_v45 }
  0x56   :  { %600 = vmatpush.bf16.msra.mxu2 %v1223_v46 }
  0x57   :  { %614 = vmatpush.bf16.msra.mxu3 %v1226_v50 }
  0x58   :  { %573 = vmatpush.bf16.msra.mxu0 %v1229_v56 }
  0x59   :  { %587 = vmatpush.bf16.msra.mxu1 %v1233_v57 }
  0x5a   :  { %601 = vmatpush.bf16.msra.mxu2 %v1235_v58 }
  0x5b   :  { %615 = vmatpush.bf16.msra.mxu3 %v1238_v62 }
  0x5c   :  { %574 = vmatpush.bf16.msra.mxu0 %v1241_v5 }
  0x5d   :  { %588 = vmatpush.bf16.msra.mxu1 %v1245_v6 }
  0x5e   :  { %602 = vmatpush.bf16.msra.mxu2 %v1247_v9 }
  0x5f   :  { %616 = vmatpush.bf16.msra.mxu3 %v1250_v14 }
  0x60   :  { %575 = vmatpush.bf16.msra.mxu0 %v1253_v23 }
  0x61   :  { %589 = vmatpush.bf16.msra.mxu1 %v1257_v27 }
  0x62   :  { %603 = vmatpush.bf16.msra.mxu2 %v1259_v28 }
  0x63   :  { %617 = vmatpush.bf16.msra.mxu3 %v1262_v35 }
  0x64   :  { %576 = vmatpush.bf16.msra.mxu0 %v1265_v43 }
  0x65   :  { %590 = vmatpush.bf16.msra.mxu1 %v1269_v51 }
  0x66   :  { %604 = vmatpush.bf16.msra.mxu2 %v1271_v52 }
  0x67   :  { %618 = vmatpush.bf16.msra.mxu3 %v1274_v55  ;;  %577 = vmatmul.bf16.vlgmr.msra.gmra.mxu0 %v565_v63 }
  0x68   :  { %625 = vmatpush.bf16.msrb.mxu0 %v1276_v59  ;;  %591 = vmatmul.bf16.vlgmr.msra.gmra.mxu1 %v566_v42 }
  0x69   :  { %639 = vmatpush.bf16.msrb.mxu1 %v1278_v60  ;;  %605 = vmatmul.bf16.vlgmr.msra.gmra.mxu2 %v565_v63 }
  0x6a   :  { %653 = vmatpush.bf16.msrb.mxu2 %v1645_v26  ;;  %619 = vmatmul.bf16.vlgmr.msra.gmra.mxu3 %v566_v42 }
  0x6b   :  { %667 = vmatpush.bf16.msrb.mxu3 %v1646_v4 }
  0x6c   :  { %626 = vmatpush.bf16.msrb.mxu0 %v1647_v15 }
  0x6d   :  { %640 = vmatpush.bf16.msrb.mxu1 %v1648_v20 }
  0x6e   :  { %654 = vmatpush.bf16.msrb.mxu2 %v1649_v37 }
  0x6f   :  { %668 = vmatpush.bf16.msrb.mxu3 %v1650_v18 }
  0x70   :  { %627 = vmatpush.bf16.msrb.mxu0 %v1651_v41 }
  0x71   :  { %641 = vmatpush.bf16.msrb.mxu1 %v1652_v54  ;;  %v1658_v54 = vld [vmem:[#allocation24_spill] sm:$0xff] }
  0x72   :  { %655 = vmatpush.bf16.msrb.mxu2 %v1653_v40  ;;  %v1659_v40 = vld [vmem:[#allocation25_spill] sm:$0xff] }
  0x73   :  { %669 = vmatpush.bf16.msrb.mxu3 %v1324_v10 }
  0x74   :  { %628 = vmatpush.bf16.msrb.mxu0 %v1331_v32 }
  0x75   :  { %642 = vmatpush.bf16.msrb.mxu1 %v1333_v36 }
  0x76   :  { %656 = vmatpush.bf16.msrb.mxu2 %v1654_v61 }
  0x77   :  { %670 = vmatpush.bf16.msrb.mxu3 %v1655_v2 }
  0x78   :  { %629 = vmatpush.bf16.msrb.mxu0 %v1357_v48 }
  0x79   :  { %643 = vmatpush.bf16.msrb.mxu1 %v1365_v31 }
  0x7a   :  { %657 = vmatpush.bf16.msrb.mxu2 %v1656_v0 }
  0x7b   :  { %671 = vmatpush.bf16.msrb.mxu3 %v1657_v22 }
  0x7c   :  { %630 = vmatpush.bf16.msrb.mxu0 %v1658_v54 }
  0x7d   :  { %644 = vmatpush.bf16.msrb.mxu1 %v1659_v40 }
  0x7e   :  { %658 = vmatpush.bf16.msrb.mxu2 %v1383_v13 }
  0x7f   :  { %672 = vmatpush.bf16.msrb.mxu3 %v1386_v49 }
  0x80   :  { %631 = vmatpush.bf16.msrb.mxu0 %v1389_v24 }
  0x81   :  { %645 = vmatpush.bf16.msrb.mxu1 %v1393_v53 }
  0x82   :  { %659 = vmatpush.bf16.msrb.mxu2 %v1395_v30 }
  0x83   :  { %673 = vmatpush.bf16.msrb.mxu3 %v1398_v47 }
  0x84   :  { %632 = vmatpush.bf16.msrb.mxu0 %v1401_v11 }
  0x85   :  { %646 = vmatpush.bf16.msrb.mxu1 %v1405_v39 }
  0x86   :  { %660 = vmatpush.bf16.msrb.mxu2 %v1407_v1 }
  0x87   :  { %674 = vmatpush.bf16.msrb.mxu3 %v1410_v19  ;;  %633 = vmatmul.bf16.vlgmr.msrb.gmra.mxu0 %v565_v63 }
  0x88   :  { %681 = vmatpush.bf16.msra.mxu0 %v1184_v3  ;;  %647 = vmatmul.bf16.vlgmr.msrb.gmra.mxu1 %v566_v42  ;;  %v1660_v3 = vld [vmem:[#allocation20_spill] sm:$0xff] }
  0x89   :  { %695 = vmatpush.bf16.msra.mxu1 %v1186_v7  ;;  %661 = vmatmul.bf16.vlgmr.msrb.gmra.mxu2 %v565_v63  ;;  %v107_v7 = vunpack.c.l.bf16 %v1660_v3 }
  0x8a   :  { %709 = vmatpush.bf16.msra.mxu2 %v1188_v8  ;;  %675 = vmatmul.bf16.vlgmr.msrb.gmra.mxu3 %v566_v42  ;;  %v1661_v8 = vld [vmem:[#allocation21_spill] sm:$0xff] }
  0x8b   :  { %723 = vmatpush.bf16.msra.mxu3 %v1191_v12  ;;  %v109_v12 = vunpack.c.l.bf16 %v1661_v8 }
  0x8c   :  { %682 = vmatpush.bf16.msra.mxu0 %v1195_v16  ;;  %v108_v16 = vunpack.c.h.bf16 %v1660_v3 }
  0x8d   :  { %696 = vmatpush.bf16.msra.mxu1 %v1197_v17  ;;  %v110_v17 = vunpack.c.h.bf16 %v1661_v8 }
  0x8e   :  { %710 = vmatpush.bf16.msra.mxu2 %v1200_v21  ;;  %v1662_v21 = vld [vmem:[#allocation15_spill] sm:$0xff] }
  0x8f   :  { %724 = vmatpush.bf16.msra.mxu3 %v1202_v25  ;;  %v111_v25 = vsub.f32 %v1662_v21, %v107_v7 }
  0x90   :  { %683 = vmatpush.bf16.msra.mxu0 %v1205_v29  ;;  %v1663_v29 = vld [vmem:[#allocation18_spill] sm:$0xff] }
  0x91   :  { %697 = vmatpush.bf16.msra.mxu1 %v1209_v33  ;;  %v113_v33 = vsub.f32 %v1663_v29, %v109_v12 }
  0x92   :  { %711 = vmatpush.bf16.msra.mxu2 %v1211_v34  ;;  %v1664_v34 = vld [vmem:[#allocation16_spill] sm:$0xff] }
  0x93   :  { %725 = vmatpush.bf16.msra.mxu3 %v1214_v38  ;;  %v112_v38 = vsub.f32 %v1664_v34, %v108_v16 }
  0x94   :  { %684 = vmatpush.bf16.msra.mxu0 %v1217_v44  ;;  %v1665_v44 = vld [vmem:[#allocation19_spill] sm:$0xff] }
  0x95   :  { %698 = vmatpush.bf16.msra.mxu1 %v1221_v45  ;;  %v114_v45 = vsub.f32 %v1665_v44, %v110_v17 }
  0x96   :  { %712 = vmatpush.bf16.msra.mxu2 %v1223_v46  ;;  %v115_v46 = vpack.c.bf16 %v113_v33, %v111_v25 }
  0x97   :  { %726 = vmatpush.bf16.msra.mxu3 %v1226_v50  ;;  %v116_v50 = vpack.c.bf16 %v114_v45, %v112_v38 }
  0x98   :  { %685 = vmatpush.bf16.msra.mxu0 %v1229_v56  ;;  %v1666_v56 = vld [vmem:[#allocation12_spill] sm:$0xff] }
  0x99   :  { %699 = vmatpush.bf16.msra.mxu1 %v1233_v57  ;;  %v1667_v57 = vld [vmem:[#allocation13_spill] sm:$0xff] }
  0x9a   :  { %713 = vmatpush.bf16.msra.mxu2 %v1235_v58 }
  0x9b   :  { %727 = vmatpush.bf16.msra.mxu3 %v1238_v62 }
  0x9c   :  { %686 = vmatpush.bf16.msra.mxu0 %v1241_v5 }
  0x9d   :  { %700 = vmatpush.bf16.msra.mxu1 %v1245_v6 }
  0x9e   :  { %714 = vmatpush.bf16.msra.mxu2 %v1247_v9 }
  0x9f   :  { %728 = vmatpush.bf16.msra.mxu3 %v1250_v14 }
  0xa0   :  { %687 = vmatpush.bf16.msra.mxu0 %v1253_v23 }
  0xa1   :  { %701 = vmatpush.bf16.msra.mxu1 %v1257_v27 }
  0xa2   :  { %715 = vmatpush.bf16.msra.mxu2 %v1259_v28 }
  0xa3   :  { %729 = vmatpush.bf16.msra.mxu3 %v1262_v35 }
  0xa4   :  { %688 = vmatpush.bf16.msra.mxu0 %v1265_v43 }
  0xa5   :  { %702 = vmatpush.bf16.msra.mxu1 %v1269_v51 }
  0xa6   :  { %716 = vmatpush.bf16.msra.mxu2 %v1271_v52 }
  0xa7   :  { %730 = vmatpush.bf16.msra.mxu3 %v1274_v55  ;;  %689 = vmatmul.bf16.vlgmr.msra.gmra.mxu0 %v115_v46 }
  0xa8   :  { %737 = vmatpush.bf16.msrb.mxu0 %v1276_v59  ;;  %703 = vmatmul.bf16.vlgmr.msra.gmra.mxu1 %v116_v50 }
  0xa9   :  { %751 = vmatpush.bf16.msrb.mxu1 %v1278_v60  ;;  %717 = vmatmul.bf16.vlgmr.msra.gmra.mxu2 %v115_v46 }
  0xaa   :  { %765 = vmatpush.bf16.msrb.mxu2 %v1645_v26  ;;  %731 = vmatmul.bf16.vlgmr.msra.gmra.mxu3 %v116_v50 }
  0xab   :  { %779 = vmatpush.bf16.msrb.mxu3 %v1646_v4 }
  0xac   :  { %738 = vmatpush.bf16.msrb.mxu0 %v1647_v15 }
  0xad   :  { %752 = vmatpush.bf16.msrb.mxu1 %v1648_v20 }
  0xae   :  { %766 = vmatpush.bf16.msrb.mxu2 %v1649_v37 }
  0xaf   :  { %780 = vmatpush.bf16.msrb.mxu3 %v1650_v18 }
  0xb0   :  { %739 = vmatpush.bf16.msrb.mxu0 %v1651_v41 }
  0xb1   :  { %753 = vmatpush.bf16.msrb.mxu1 %v1666_v56 }
  0xb2   :  { %767 = vmatpush.bf16.msrb.mxu2 %v1667_v57 }
  0xb3   :  { %781 = vmatpush.bf16.msrb.mxu3 %v1324_v10 }
  0xb4   :  { %740 = vmatpush.bf16.msrb.mxu0 %v1331_v32 }
  0xb5   :  { %754 = vmatpush.bf16.msrb.mxu1 %v1333_v36 }
  0xb6   :  { %768 = vmatpush.bf16.msrb.mxu2 %v1654_v61 }
  0xb7   :  { %782 = vmatpush.bf16.msrb.mxu3 %v1655_v2 }
  0xb8   :  { %741 = vmatpush.bf16.msrb.mxu0 %v1357_v48  ;;  %v456_v58 = vpop.f32.mrf.mxu0 }
  0xb9   :  { %755 = vmatpush.bf16.msrb.mxu1 %v1365_v31  ;;  %v470_v62 = vpop.f32.mrf.mxu1 }
  0xba   :  { %769 = vmatpush.bf16.msrb.mxu2 %v1656_v0  ;;  %v471_v4 = vadd.f32 %v470_v62, %v456_v58 }
  0xbb   :  { %783 = vmatpush.bf16.msrb.mxu3 %v1657_v22 }
  0xbc   :  { %742 = vmatpush.bf16.msrb.mxu0 %v1658_v54  ;;  %v484_v5 = vpop.f32.mrf.mxu2 }
  0xbd   :  { %756 = vmatpush.bf16.msrb.mxu1 %v1659_v40  ;;  %v498_v6 = vpop.f32.mrf.mxu3 }
  0xbe   :  { %770 = vmatpush.bf16.msrb.mxu2 %v1383_v13  ;;  %v499_v61 = vadd.f32 %v498_v6, %v484_v5 }
  0xbf   :  { %784 = vmatpush.bf16.msrb.mxu3 %v1386_v49 }
  0xc0   :  { %743 = vmatpush.bf16.msrb.mxu0 %v1389_v24  ;;  %v458_v9 = vpop.f32.mrf.mxu0 }
  0xc1   :  { %757 = vmatpush.bf16.msrb.mxu1 %v1393_v53  ;;  %v472_v14 = vpop.f32.mrf.mxu1 }
  0xc2   :  { %771 = vmatpush.bf16.msrb.mxu2 %v1395_v30  ;;  %v473_v2 = vadd.f32 %v472_v14, %v458_v9 }
  0xc3   :  { %785 = vmatpush.bf16.msrb.mxu3 %v1398_v47 }
  0xc4   :  { %744 = vmatpush.bf16.msrb.mxu0 %v1401_v11  ;;  %v486_v23 = vpop.f32.mrf.mxu2 }
  0xc5   :  { %758 = vmatpush.bf16.msrb.mxu1 %v1405_v39  ;;  %v500_v27 = vpop.f32.mrf.mxu3 }
  0xc6   :  { %772 = vmatpush.bf16.msrb.mxu2 %v1407_v1  ;;  %v501_v33 = vadd.f32 %v500_v27, %v486_v23 }
  0xc7   :  { %786 = vmatpush.bf16.msrb.mxu3 %v1410_v19  ;;  %745 = vmatmul.bf16.vlgmr.msrb.gmra.mxu0 %v115_v46 }
  0xc8   :  { %759 = vmatmul.bf16.vlgmr.msrb.gmra.mxu1 %v116_v50  ;;  %v512_v28 = vpop.f32.mrf.mxu0 }
  0xc9   :  { %773 = vmatmul.bf16.vlgmr.msrb.gmra.mxu2 %v115_v46  ;;  %v526_v35 = vpop.f32.mrf.mxu1 }
  0xca   :  { %787 = vmatmul.bf16.vlgmr.msrb.gmra.mxu3 %v116_v50  ;;  %v527_v43 = vadd.f32 %v526_v35, %v512_v28 }
  0xcc   :  { %v540_v51 = vpop.f32.mrf.mxu2 }
  0xcd   :  { %v554_v52 = vpop.f32.mrf.mxu3 }
  0xce   :  { %v555_v55 = vadd.f32 %v554_v52, %v540_v51 }
  0xd0   :  { %v514_v59 = vpop.f32.mrf.mxu0 }
  0xd1   :  { %v528_v60 = vpop.f32.mrf.mxu1 }
  0xd2   :  { %v529_v10 = vadd.f32 %v528_v60, %v514_v59 }
  0xd4   :  { %v542_v32 = vpop.f32.mrf.mxu2 }
  0xd5   :  { %v556_v36 = vpop.f32.mrf.mxu3 }
  0xd6   :  { %v1556_v48 = vadd.f32 %v556_v36, %v542_v32 }
  0xe4   :  { %v578_v49 = vpop.f32.mrf.mxu0 }
  0xe5   :  { %v592_v31 = vpop.f32.mrf.mxu1  ;;  %v579_v15 = vadd.f32 %v578_v49, %v471_v4 }
  0xe7   :  { %v593_v54 = vadd.f32 %v592_v31, %v579_v15 }
  0xec   :  { %v606_v11 = vpop.f32.mrf.mxu2  ;;  %v580_v24 = vpop.f32.mrf.mxu0 }
  0xed   :  { %v620_v13 = vpop.f32.mrf.mxu3  ;;  %v594_v53 = vpop.f32.mrf.mxu1  ;;  %v607_v22 = vadd.f32 %v606_v11, %v499_v61  ;;  %v581_v3 = vadd.f32 %v580_v24, %v473_v2 }
  0xef   :  { %v621_v16 = vadd.f32 %v620_v13, %v607_v22  ;;  %v595_v25 = vadd.f32 %v594_v53, %v581_v3 }
  0xf4   :  { %v608_v30 = vpop.f32.mrf.mxu2 }
  0xf5   :  { %v622_v47 = vpop.f32.mrf.mxu3  ;;  %v609_v44 = vadd.f32 %v608_v30, %v501_v33 }
  0xf7   :  { %v623_v50 = vadd.f32 %v622_v47, %v609_v44 }
 0x104   :  { %v634_v39 = vpop.f32.mrf.mxu0 }
 0x105   :  { %v648_v1 = vpop.f32.mrf.mxu1  ;;  %v635_v58 = vadd.f32 %v634_v39, %v527_v43 }
 0x107   :  { %v649_v6 = vadd.f32 %v648_v1, %v635_v58 }
 0x10c   :  { %v662_v19 = vpop.f32.mrf.mxu2  ;;  %v636_v42 = vpop.f32.mrf.mxu0 }
 0x10d   :  { %v676_v63 = vpop.f32.mrf.mxu3  ;;  %v650_v26 = vpop.f32.mrf.mxu1  ;;  %v663_v23 = vadd.f32 %v662_v19, %v555_v55  ;;  %v637_v27 = vadd.f32 %v636_v42, %v529_v10 }
 0x10f   :  { %v677_v52 = vadd.f32 %v676_v63, %v663_v23  ;;  %v651_v32 = vadd.f32 %v650_v26, %v637_v27 }
 0x114   :  { %v664_v20 = vpop.f32.mrf.mxu2 }
 0x115   :  { %v678_v37 = vpop.f32.mrf.mxu3  ;;  %v665_v31 = vadd.f32 %v664_v20, %v1556_v48 }
 0x117   :  { %v679_v11 = vadd.f32 %v678_v37, %v665_v31 }
 0x124   :  { %v690_v18 = vpop.f32.mrf.mxu0 }
 0x125   :  { %v704_v41 = vpop.f32.mrf.mxu1 }
 0x126   :  { %v705_v40 = vadd.f32 %v704_v41, %v690_v18 }
 0x128   :  { %v793_v0 = vadd.f32 %v705_v40, %v593_v54 }
 0x12a   :  { %801 = vst [vmem:[%s1585_s2] sm:$0xff] %v793_v0 }
 0x12c   :  { %v718_v7 = vpop.f32.mrf.mxu2  ;;  %v692_v12 = vpop.f32.mrf.mxu0 }
 0x12d   :  { %v732_v8 = vpop.f32.mrf.mxu3  ;;  %v706_v21 = vpop.f32.mrf.mxu1 }
 0x12e   :  { %v733_v17 = vadd.f32 %v732_v8, %v718_v7  ;;  %v707_v29 = vadd.f32 %v706_v21, %v692_v12 }
 0x130   :  { %v794_v34 = vadd.f32 %v733_v17, %v621_v16  ;;  %v797_v38 = vadd.f32 %v707_v29, %v595_v25 }
 0x132   :  { %802 = vst [vmem:[%s1585_s2 + $0x8] sm:$0xff] %v794_v34 }
 0x133   :  { %805 = vst [vmem:[%s1585_s2 + $0x20] sm:$0xff] %v797_v38 }
 0x134   :  { %v720_v45 = vpop.f32.mrf.mxu2 }
 0x135   :  { %v734_v46 = vpop.f32.mrf.mxu3 }
 0x136   :  { %v735_v56 = vadd.f32 %v734_v46, %v720_v45 }
 0x138   :  { %v798_v57 = vadd.f32 %v735_v56, %v623_v50 }
 0x13a   :  { %806 = vst [vmem:[%s1585_s2 + $0x28] sm:$0xff] %v798_v57 }
 0x144   :  { %v746_v62 = vpop.f32.mrf.mxu0 }
 0x145   :  { %v760_v5 = vpop.f32.mrf.mxu1 }
 0x146   :  { %v761_v9 = vadd.f32 %v760_v5, %v746_v62 }
 0x148   :  { %v795_v14 = vadd.f32 %v761_v9, %v649_v6 }
 0x14a   :  { %803 = vst [vmem:[%s1585_s2 + $0x10] sm:$0xff] %v795_v14 }
 0x14c   :  { %v774_v28 = vpop.f32.mrf.mxu2  ;;  %v748_v51 = vpop.f32.mrf.mxu0 }
 0x14d   :  { %v788_v35 = vpop.f32.mrf.mxu3  ;;  %v762_v60 = vpop.f32.mrf.mxu1 }
 0x14e   :  { %v789_v59 = vadd.f32 %v788_v35, %v774_v28  ;;  %v763_v36 = vadd.f32 %v762_v60, %v748_v51 }
 0x150   :  { %v796_v43 = vadd.f32 %v789_v59, %v677_v52  ;;  %v799_v49 = vadd.f32 %v763_v36, %v651_v32 }
 0x152   :  { %804 = vst [vmem:[%s1585_s2 + $0x18] sm:$0xff] %v796_v43 }
 0x153   :  { %807 = vst [vmem:[%s1585_s2 + $0x30] sm:$0xff] %v799_v49 }
 0x154   :  { %v776_v55 = vpop.f32.mrf.mxu2 }
 0x155   :  { %v790_v10 = vpop.f32.mrf.mxu3 }
 0x156   :  { %v791_v13 = vadd.f32 %v790_v10, %v776_v55 }
 0x158   :  { %v800_v24 = vadd.f32 %v791_v13, %v679_v11 }
 0x15a   :  { %808 = vst [vmem:[%s1585_s2 + $0x38] sm:$0xff] %v800_v24 }
 0x15b   :  { %813 = vsyncpa [#allocation3], 1 }

</bundles_post_ra>
